<compile_context>
chip_gen: v7x
topology: tpu7x:2x2x1
jax: 0.10.0
libtpu: 0.0.40
codegen_flags: <defaults>
</compile_context>

<pallas_src>
import functools
import math

import jax
import jax.numpy as jnp
from jax import lax
from jax.experimental import pallas as pl
from jax.experimental.pallas import tpu as pltpu


# ----------------------------------------------------------------------------
# Kernel 1: fused Q/K/V projection, tiled over tokens, three lane-dense outputs.
#   x: (tn, H) bf16   w: (H, 3H) bf16 (grid-invariant, single-buffered)
#   b: (1, 3H) f32    q/k/v out: (tn, H) bf16
# ----------------------------------------------------------------------------
def qkv_proj_kernel(x_ref, w_ref, b_ref, q_ref, k_ref, v_ref, *, hidden):
    y = jnp.dot(x_ref[...], w_ref[...],
                preferred_element_type=jnp.float32) + b_ref[...]
    q_ref[...] = y[:, :hidden].astype(q_ref.dtype)
    k_ref[...] = y[:, hidden:2 * hidden].astype(k_ref.dtype)
    v_ref[...] = y[:, 2 * hidden:].astype(v_ref.dtype)


def qkv_projection(x2d, w_qkv, b_qkv, *, tile_n=1024):
    N, H = x2d.shape
    H3 = w_qkv.shape[1]
    tn = min(tile_n, N)
    out_sds = jax.ShapeDtypeStruct((N, H), jnp.bfloat16)
    out_spec = pl.BlockSpec((tn, H), lambda i: (i, 0))
    return pl.pallas_call(
        functools.partial(qkv_proj_kernel, hidden=H),
        out_shape=(out_sds, out_sds, out_sds),
        grid=(pl.cdiv(N, tn),),
        in_specs=[
            pl.BlockSpec((tn, H), lambda i: (i, 0)),
            # Grid-invariant weight / bias: no double-buffering needed.
            pl.BlockSpec((H, H3), lambda i: (0, 0),
                         pipeline_mode=pl.Buffered(1)),
            pl.BlockSpec((1, H3), lambda i: (0, 0),
                         pipeline_mode=pl.Buffered(1)),
        ],
        out_specs=(out_spec, out_spec, out_spec),
        compiler_params=pltpu.CompilerParams(
            dimension_semantics=("parallel",),
            vmem_limit_bytes=48 * 1024 * 1024),
    )(x2d, w_qkv, b_qkv)


# ----------------------------------------------------------------------------
# Kernel 2: scaled dot-product attention.  Grid = (B, S // tq), both parallel.
#   q: (1, tq, H) bf16     k, v: (1, S, H) bf16 (qi-invariant blocks)
#   mask (optional): (1,1,1,S) or (1,1,tq,S) f32 additive
#   ctx out: (1, tq, H) bf16     probs out (optional): (1, nh, tq, S) bf16
# ----------------------------------------------------------------------------
def attn_kernel(*refs, nh, d, want_mask, want_probs):
    n_in = 3 + int(want_mask)
    q_ref, k_ref, v_ref = refs[0], refs[1], refs[2]
    mask_ref = refs[3] if want_mask else None
    ctx_ref = refs[n_in]
    probs_ref = refs[n_in + 1] if want_probs else None

    q = q_ref[0]                                  # (tq, H) bf16, scale folded in
    k = k_ref[0]                                  # (S,  H) bf16
    v = v_ref[0]                                  # (S,  H) bf16
    mask = mask_ref[0, 0] if want_mask else None  # (1, S) or (tq, S) f32

    ctx_parts = []
    for h in range(nh):                           # static head loop, 2-D ops only
        lo = h * d
        qh = q[:, lo:lo + d]                      # (tq, d) static lane slice
        kh = k[:, lo:lo + d]                      # (S,  d)
        vh = v[:, lo:lo + d]                      # (S,  d)

        # q @ k^T without transposing k: contract the last dims on the MXU.
        s = lax.dot_general(qh, kh, (((1,), (1,)), ((), ())),
                            preferred_element_type=jnp.float32)   # (tq, S)
        if want_mask:
            s = s + mask

        m = jnp.max(s, axis=-1, keepdims=True)
        e = jnp.exp(s - m)
        denom = jnp.sum(e, axis=-1, keepdims=True)
        # Exact reciprocal when probs are user-visible (rows sum to 1);
        # EUP approx otherwise (free slot).
        p = e * pl.reciprocal(denom, approx=not want_probs)

        if want_probs:
            probs_ref[0, h] = p.astype(probs_ref.dtype)           # (tq, S) store

        ctx_parts.append(jnp.dot(p.astype(v.dtype), vh,
                                 preferred_element_type=jnp.float32))

    # One lane-dense (tq, H) store instead of nh masked d-lane stores.
    ctx_ref[0] = jnp.concatenate(ctx_parts, axis=-1).astype(ctx_ref.dtype)


def attention(q3, k3, v3, mask4, *, nh, d, output_attentions, tile_q=256):
    B, S, H = q3.shape
    tq = min(tile_q, S)
    n_q = pl.cdiv(S, tq)
    want_mask = mask4 is not None

    kernel = functools.partial(attn_kernel, nh=nh, d=d,
                               want_mask=want_mask,
                               want_probs=output_attentions)

    in_specs = [
        pl.BlockSpec((1, tq, H), lambda b, qi: (b, qi, 0)),
        pl.BlockSpec((1, S, H), lambda b, qi: (b, 0, 0)),
        pl.BlockSpec((1, S, H), lambda b, qi: (b, 0, 0)),
    ]
    args = [q3, k3, v3]
    if want_mask:
        if mask4.shape[2] == 1:        # standard (B,1,1,S) extended mask
            in_specs.append(
                pl.BlockSpec((1, 1, 1, S), lambda b, qi: (b, 0, 0, 0)))
        else:                          # (B,1,S,S) causal/extended mask
            in_specs.append(
                pl.BlockSpec((1, 1, tq, S), lambda b, qi: (b, 0, qi, 0)))
        args.append(mask4)

    ctx_sds = jax.ShapeDtypeStruct((B, S, H), jnp.bfloat16)
    ctx_spec = pl.BlockSpec((1, tq, H), lambda b, qi: (b, qi, 0))
    if output_attentions:
        out_shape = (ctx_sds, jax.ShapeDtypeStruct((B, nh, S, S), jnp.bfloat16))
        out_specs = (ctx_spec,
                     pl.BlockSpec((1, nh, tq, S), lambda b, qi: (b, 0, qi, 0)))
    else:
        out_shape = ctx_sds
        out_specs = ctx_spec

    outs = pl.pallas_call(
        kernel,
        out_shape=out_shape,
        grid=(B, n_q),
        in_specs=in_specs,
        out_specs=out_specs,
        compiler_params=pltpu.CompilerParams(
            dimension_semantics=("parallel", "parallel"),
            vmem_limit_bytes=40 * 1024 * 1024),
    )(*args)

    if output_attentions:
        return outs[0], outs[1]
    return outs, None


# ----------------------------------------------------------------------------
# Module wrapper (glue in plain JAX: free reshapes only, no transposes).
# ----------------------------------------------------------------------------
def fuse_qkv_params(wq, bq, wk, bk, wv, bv, num_attention_heads):
    """PyTorch nn.Linear stores W as (out, in); y = x @ W^T + b.  Fuse and
    pre-transpose once, folding the 1/sqrt(d) softmax scale into the Q
    columns and bias so the attention kernel never scales the scores."""
    d = wq.shape[0] // num_attention_heads
    scale = 1.0 / math.sqrt(d)
    w_qkv = jnp.concatenate([wq.T * scale, wk.T, wv.T],
                            axis=1).astype(jnp.bfloat16)
    b_qkv = jnp.concatenate([bq.reshape(1, -1) * scale,
                             bk.reshape(1, -1),
                             bv.reshape(1, -1)], axis=1).astype(jnp.float32)
    return w_qkv, b_qkv


def bert_self_attention(hidden_states, fused_params, attention_mask=None,
                        num_attention_heads=4, output_attentions=True):
    B, S, H = hidden_states.shape
    nh = num_attention_heads
    d = H // nh
    w_qkv, b_qkv = fused_params

    x2d = hidden_states.reshape(B * S, H).astype(jnp.bfloat16)
    q2d, k2d, v2d = qkv_projection(x2d, w_qkv, b_qkv)
    q3 = q2d.reshape(B, S, H)          # free, row-major reshapes
    k3 = k2d.reshape(B, S, H)
    v3 = v2d.reshape(B, S, H)

    mask4 = None if attention_mask is None else attention_mask.astype(jnp.float32)

    ctx, probs = attention(q3, k3, v3, mask4, nh=nh, d=d,
                           output_attentions=output_attentions)
    if output_attentions:
        return ctx, probs
    return (ctx,)


def init_params(key, hidden_size):
    keys = jax.random.split(key, 6)
    scale = 1.0 / math.sqrt(hidden_size)
    make_w = lambda k: jax.random.uniform(k, (hidden_size, hidden_size),
                                          jnp.float32, -scale, scale)
    make_b = lambda k: jax.random.uniform(k, (1, hidden_size),
                                          jnp.float32, -scale, scale)
    return {
        "wq": make_w(keys[0]), "bq": make_b(keys[1]),
        "wk": make_w(keys[2]), "bk": make_b(keys[3]),
        "wv": make_w(keys[4]), "bv": make_b(keys[5]),
    }


def reference_attention(x, p, mask, nh):
    """Pure-JAX f32 mirror of the PyTorch module (eval mode)."""
    B, S, H = x.shape
    d = H // nh
    q = x @ p["wq"].T + p["bq"]
    k = x @ p["wk"].T + p["bk"]
    v = x @ p["wv"].T + p["bv"]
    split = lambda t: t.reshape(B, S, nh, d).transpose(0, 2, 1, 3)
    q, k, v = split(q), split(k), split(v)
    s = jnp.einsum("bhqd,bhkd->bhqk", q, k) / math.sqrt(d)
    if mask is not None:
        s = s + mask
    probs = jax.nn.softmax(s, axis=-1)
    ctx = jnp.einsum("bhqk,bhkd->bhqd", probs, v)
    ctx = ctx.transpose(0, 2, 1, 3).reshape(B, S, H)
    return ctx, probs


if __name__ == "__main__":
    B, S, H, NH = 2, 8, 32, 4

    key = jax.random.PRNGKey(0)
    k_x, k_p, k_m = jax.random.split(key, 3)

    hidden_states = jax.random.normal(k_x, (B, S, H), jnp.float32)
    params = init_params(k_p, H)
    fused = fuse_qkv_params(params["wq"], params["bq"],
                            params["wk"], params["bk"],
                            params["wv"], params["bv"],
                            num_attention_heads=NH)

    # Standard BERT extended attention mask: 0 for keep, -10000 for masked.
    keep = (jax.random.uniform(k_m, (B, 1, 1, S)) > 0.2).astype(jnp.float32)
    attention_mask = (1.0 - keep) * -10000.0

    context, attn_probs = bert_self_attention(
        hidden_states, fused, attention_mask,
        num_attention_heads=NH, output_attentions=True)
    jax.block_until_ready((context, attn_probs))

    assert context.shape == (B, S, H)
    assert attn_probs.shape == (B, NH, S, S)
    context_f32 = context.astype(jnp.float32)
    probs_f32 = attn_probs.astype(jnp.float32)
    assert bool(jnp.isfinite(context_f32).all())
    assert bool(jnp.isfinite(probs_f32).all())

    # Correctness vs. an f32 reference (bf16 activations -> loose tolerance).
    ctx_exp, probs_exp = reference_attention(hidden_states, params,
                                             attention_mask, NH)
    ctx_err = float(jnp.max(jnp.abs(context_f32 - ctx_exp)))
    prob_err = float(jnp.max(jnp.abs(probs_f32 - probs_exp)))
    assert ctx_err < 1e-1, f"context max abs err {ctx_err}"
    assert prob_err < 5e-2, f"probs max abs err {prob_err}"

    print("KERNEL_OK")
</pallas_src>

<mosaic_0001>
module attributes {stable_mosaic.version = 11 : i64} {
  func.func @qkv_proj_kernel(%arg0: i32, %arg1: memref<16x32xbf16, #tpu.memory_space<vmem>>, %arg2: memref<32x96xbf16, #tpu.memory_space<vmem>>, %arg3: memref<1x96xf32, #tpu.memory_space<vmem>>, %arg4: memref<16x32xbf16, #tpu.memory_space<vmem>>, %arg5: memref<16x32xbf16, #tpu.memory_space<vmem>>, %arg6: memref<16x32xbf16, #tpu.memory_space<vmem>>) attributes {dimension_semantics = [#tpu.dimension_semantics<parallel>], iteration_bounds = array<i64: 1>, scalar_prefetch = 0 : i64, scratch_operands = 0 : i64, tpu.core_type = #tpu.core_type<tc>, window_params = [{transform_indices = @transform_0, window_bounds = array<i64: 16, 32>}, {pipeline_mode = #tpu.pipeline_mode<synchronous>, transform_indices = @transform_1, window_bounds = array<i64: 32, 96>}, {pipeline_mode = #tpu.pipeline_mode<synchronous>, transform_indices = @transform_2, window_bounds = array<i64: 1, 96>}, {transform_indices = @transform_3, window_bounds = array<i64: 16, 32>}, {transform_indices = @transform_4, window_bounds = array<i64: 16, 32>}, {transform_indices = @transform_5, window_bounds = array<i64: 16, 32>}]} {
    %c0 = arith.constant 0 : index
    %c0_0 = arith.constant 0 : index
    %0 = vector.load %arg1[%c0, %c0_0] : memref<16x32xbf16, #tpu.memory_space<vmem>>, vector<16x32xbf16>
    %c0_1 = arith.constant 0 : index
    %c0_2 = arith.constant 0 : index
    %1 = vector.load %arg2[%c0_1, %c0_2] : memref<32x96xbf16, #tpu.memory_space<vmem>>, vector<32x96xbf16>
    %cst = arith.constant dense<0.000000e+00> : vector<16x96xf32>
    %2 = tpu.matmul %0, %1, %cst {dimension_numbers = #tpu.dot_dimension_numbers<[1], [0], [0], [1], [0, 0, 1, 1], [], []>} : vector<16x32xbf16>, vector<32x96xbf16>, vector<16x96xf32> -> vector<16x96xf32>
    %c0_3 = arith.constant 0 : index
    %c0_4 = arith.constant 0 : index
    %3 = vector.load %arg3[%c0_3, %c0_4] : memref<1x96xf32, #tpu.memory_space<vmem>>, vector<1x96xf32>
    %4 = vector.broadcast %3 : vector<1x96xf32> to vector<16x96xf32>
    %5 = arith.addf %2, %4 : vector<16x96xf32>
    %6 = vector.extract_strided_slice %5 {offsets = [0, 0], sizes = [16, 32], strides = [1, 1]} : vector<16x96xf32> to vector<16x32xf32>
    %7 = arith.truncf %6 : vector<16x32xf32> to vector<16x32xbf16>
    %c0_5 = arith.constant 0 : index
    %c0_6 = arith.constant 0 : index
    %8 = vector.load %arg4[%c0_5, %c0_6] : memref<16x32xbf16, #tpu.memory_space<vmem>>, vector<16x32xbf16>
    tpu.vector_store %arg4[%c0_5, %c0_6], %7 {strides = array<i32>} : memref<16x32xbf16, #tpu.memory_space<vmem>>, vector<16x32xbf16>,
    %9 = vector.extract_strided_slice %5 {offsets = [0, 32], sizes = [16, 32], strides = [1, 1]} : vector<16x96xf32> to vector<16x32xf32>
    %10 = arith.truncf %9 : vector<16x32xf32> to vector<16x32xbf16>
    %c0_7 = arith.constant 0 : index
    %c0_8 = arith.constant 0 : index
    %11 = vector.load %arg5[%c0_7, %c0_8] : memref<16x32xbf16, #tpu.memory_space<vmem>>, vector<16x32xbf16>
    tpu.vector_store %arg5[%c0_7, %c0_8], %10 {strides = array<i32>} : memref<16x32xbf16, #tpu.memory_space<vmem>>, vector<16x32xbf16>,
    %12 = vector.extract_strided_slice %5 {offsets = [0, 64], sizes = [16, 32], strides = [1, 1]} : vector<16x96xf32> to vector<16x32xf32>
    %13 = arith.truncf %12 : vector<16x32xf32> to vector<16x32xbf16>
    %c0_9 = arith.constant 0 : index
    %c0_10 = arith.constant 0 : index
    %14 = vector.load %arg6[%c0_9, %c0_10] : memref<16x32xbf16, #tpu.memory_space<vmem>>, vector<16x32xbf16>
    tpu.vector_store %arg6[%c0_9, %c0_10], %13 {strides = array<i32>} : memref<16x32xbf16, #tpu.memory_space<vmem>>, vector<16x32xbf16>,
    return
  }
  func.func @transform_0(%arg0: i32) -> (i32, i32) {
    %c0_i32 = arith.constant 0 : i32
    %c0_i32_0 = arith.constant 0 : i32
    return %arg0, %c0_i32 : i32, i32
  }
  func.func @transform_1(%arg0: i32) -> (i32, i32) {
    %c0_i32 = arith.constant 0 : i32
    %c0_i32_0 = arith.constant 0 : i32
    %c0_i32_1 = arith.constant 0 : i32
    return %c0_i32, %c0_i32_0 : i32, i32
  }
  func.func @transform_2(%arg0: i32) -> (i32, i32) {
    %c0_i32 = arith.constant 0 : i32
    %c0_i32_0 = arith.constant 0 : i32
    %c0_i32_1 = arith.constant 0 : i32
    return %c0_i32, %c0_i32_0 : i32, i32
  }
  func.func @transform_3(%arg0: i32) -> (i32, i32) {
    %c0_i32 = arith.constant 0 : i32
    %c0_i32_0 = arith.constant 0 : i32
    return %arg0, %c0_i32 : i32, i32
  }
  func.func @transform_4(%arg0: i32) -> (i32, i32) {
    %c0_i32 = arith.constant 0 : i32
    %c0_i32_0 = arith.constant 0 : i32
    return %arg0, %c0_i32 : i32, i32
  }
  func.func @transform_5(%arg0: i32) -> (i32, i32) {
    %c0_i32 = arith.constant 0 : i32
    %c0_i32_0 = arith.constant 0 : i32
    return %arg0, %c0_i32 : i32, i32
  }
}

</mosaic_0001>

<bundles_post_ra>
// kernel: tpu_custom_call.1
= control target key start
LH: loop header
LB: loop body
LE: loop exit
PB: predicated region body
PF: predicated region fallthrough
CT: control target
= control target key end

     0   :  { %11 = vsyncpa [#allocation3], 0  ;;  %s483_s0 = inlined_call_operand.hbm [shape: bf16[16,32], index: 0, kind: input, shape index: {}]   ;;  %s484_s1 = inlined_call_operand.hbm [shape: bf16[32,96], index: 1, kind: input, shape index: {}]   ;;  %s485_s2 = inlined_call_operand.vmem [shape: f32[1,96], index: 2, kind: input, shape index: {}]   ;;  %s486_s3 = inlined_call_operand.hbm [shape: bf16[16,32], index: 3, kind: output, shape index: {0}]   ;;  %s487_s4 = inlined_call_operand.hbm [shape: bf16[16,32], index: 4, kind: output, shape index: {1}]   ;;  %s488_s5 = inlined_call_operand.hbm [shape: bf16[16,32], index: 5, kind: output, shape index: {2}]  }
   0x1   :  { %12 = vsyncpa [#allocation6], 0 }
   0x2   :  { %13 = vsyncpa [#allocation4], 0 }
   0x3   :  { %14 = vsyncpa [#allocation9], 0  ;;  %s350_s18 = smov [#allocation2]   ;;  %s232_s22 = scalar_lea.hbm %s483_s0, 128 }
   0x4   :  { %s20_s19 = sshll.u32 %s350_s18, 4  ;;  %p233_p0 = scmp.ne.s32.totalorder %s483_s0, %s232_s22  ;;  %s21_s19 = int_to_ptr.vmem [resolvable:$true] %s20_s19 }
   0x5   :  { %p236_p1 = scmp.lt.u32.totalorder %s232_s22, %s483_s0 }
   0x7   :  { %p238_p2 = pnand %p236_p1, %p233_p0 }
   0x9   :  { %241 = shalt.err (!%p238_p2)
}
   0xa   :  { %s242_s27 = scalar_lea.vmem %s21_s19, 128  ;;  %p247_p4 = scmp.lt.s32.totalorder %s21_s19, %s21_s19 }
   0xb   :  { %p243_p3 = scmp.ne.s32.totalorder %s21_s19, %s242_s27  ;;  %p248_p5 = scmp.lt.s32.totalorder %s242_s27, %s242_s27 }
   0xd   :  { %p249_p6 = por %p248_p5, %p247_p4 }
   0xf   :  { %p250_p7 = pnand %p249_p6, %p243_p3 }
  0x11   :  { %253 = shalt.err (!%p250_p7)
}
  0x12   :  { %s351_s28 = smov 64   ;;  %s352_s29 = smov 4  }
  0x13   :  { %26 = dma.hbm_to_vmem [thread:$0]  %s483_s0, 128, %s21_s19, [#allocation3], %s351_s28, %s351_s28, %s352_s29  }
  0x14   :  { %s353_s7 = smov [#allocation5]   ;;  %s254_s11 = scalar_lea.hbm %s484_s1, 256 }
  0x15   :  { %s32_s8 = sshll.u32 %s353_s7, 4  ;;  %p255_p8 = scmp.ne.s32.totalorder %s484_s1, %s254_s11  ;;  %s33_s8 = int_to_ptr.vmem [resolvable:$true] %s32_s8 }
  0x16   :  { %p258_p9 = scmp.lt.u32.totalorder %s254_s11, %s484_s1 }
  0x18   :  { %p260_p10 = pnand %p258_p9, %p255_p8 }
  0x1a   :  { %263 = shalt.err (!%p260_p10)
}
  0x1b   :  { %s264_s16 = scalar_lea.vmem %s33_s8, 256  ;;  %p269_p12 = scmp.lt.s32.totalorder %s33_s8, %s33_s8 }
  0x1c   :  { %p265_p11 = scmp.ne.s32.totalorder %s33_s8, %s264_s16  ;;  %p270_p13 = scmp.lt.s32.totalorder %s264_s16, %s264_s16 }
  0x1e   :  { %p271_p0 = por %p270_p13, %p269_p12 }
  0x20   :  { %p272_p1 = pnand %p271_p0, %p265_p11 }
  0x22   :  { %275 = shalt.err (!%p272_p1)
}
  0x23   :  { %38 = dma.hbm_to_vmem [thread:$0]  %s484_s1, 256, %s33_s8, [#allocation6], %s351_s28, %s351_s28, %s352_s29  }
  0x24   :  { %342 = dma.done.wait [#allocation3], 128  }
  0x25   :  { %343 = vsyncadd [#allocation3], 4294967168 }
  0x26   :  { %344 = dma.done.wait [#allocation6], 256  }
  0x27   :  { %345 = vsyncadd [#allocation6], 4294967040  ;;  %v354_v0 = vmov 0.0   ;;  %vm355_vm0 = vmmov 0   ;;  %v229_v1 = vld [vmem:[#allocation5] sm:$0xff]   ;;  %v230_v2 = vld [vmem:[#allocation5 + $0x8] sm:$0xff]  }
  0x28   :  { %211 = vmatprep.subr.bf16.mxu0 %v354_v0  ;;  %215 = vmatprep.mubr.msk.bf16.mxu0 %vm355_vm0, %v354_v0  ;;  %v231_v3 = vld [vmem:[#allocation2] sm:$0xff]   ;;  %vm78_vm1 = vcmask 261120   ;;  %vm131_vm2 = vcmask 257024   ;;  %s356_s1 = smov [#allocation7]   ;;  %s357_s21 = smov 96  }
  0x29   :  { %212 = vmatpush3.bf16.msra.mxu0 %v229_v1  ;;  %v199_v4 = vld [vmem:[%s485_s2] ss:$0 sm:$0xff]  ;;  %s155_s20 = sshll.u32 %s356_s1, 4  ;;  %s156_s20 = int_to_ptr.vmem [resolvable:$true] %s155_s20 }
  0x2a   :  { %213 = vmatprep.subr.bf16.mxu0 %v354_v0  ;;  %s276_s2 = scalar_lea.vmem %s156_s20, 128  ;;  %p281_p3 = scmp.lt.s32.totalorder %s156_s20, %s156_s20 }
  0x2b   :  { %p277_p2 = scmp.ne.s32.totalorder %s156_s20, %s276_s2  ;;  %p282_p4 = scmp.lt.s32.totalorder %s276_s2, %s276_s2 }
  0x2d   :  { %214 = vmatpush3.bf16.msra.mxu0 %v230_v2  ;;  %p283_p5 = por %p282_p4, %p281_p3 }
  0x2f   :  { %p284_p6 = pnand %p283_p5, %p277_p2 }
  0x30   :  { %216 = vmatmul.mubr.msk.bf16.vlgmr.msra.gmra.mrb[0].mxu0 %vm78_vm1, %v231_v3 }
 0x103   :  { %v116_v5 = vpop.f32.mrb[0].mxu0 }
 0x104   :  { %v117_v6 = vadd.f32 %v199_v4, %v116_v5  ;;  %v217_v7 = vpop.f32.mrb[1].mxu0 }
 0x105   :  { %v119_v8 = vpop.f32.mrb[2].mxu0 }
 0x106   :  { %v206_v9 = vpack.c.bf16 %v117_v6, %v117_v6  ;;  %v120_v10 = vadd.f32 %v199_v4, %v119_v8  ;;  %v218_v11 = vpop.f32.mrb[3].mxu0 }
 0x108   :  { %v207_v12 = vpack.c.bf16 %v120_v10, %v120_v10  ;;  %142 = vrot.lane.b32.xlu1 %v206_v9, %s351_s28  ;;  %134 = vrot.lane.b32.xlu0 %v206_v9, %s357_s21  ;;  %132 = vst.msk [vmem:[#allocation7] sm:$0xf] %vm131_vm2, %v206_v9 }
 0x10a   :  { %133 = vst.msk [vmem:[#allocation7 + $0x4] sm:$0xf] %vm131_vm2, %v207_v12 }
 0x10b   :  { %287 = shalt.err (!%p284_p6)
}
 0x10c   :  { %s288_s24 = scalar_lea.hbm %s486_s3, 128 }
 0x10d   :  { %p289_p7 = scmp.ne.s32.totalorder %s486_s3, %s288_s24  ;;  %p292_p8 = scmp.lt.u32.totalorder %s288_s24, %s486_s3 }
 0x10f   :  { %p294_p9 = pnand %p292_p8, %p289_p7 }
 0x111   :  { %297 = shalt.err (!%p294_p9)
}
 0x112   :  { %161 = dma.vmem_to_hbm [thread:$0]  %s156_s20, 128, %s486_s3, [#allocation4], %s351_s28, %s351_s28, %s352_s29  }
 0x113   :  { %144 = vrot.lane.b32.xlu1 %v207_v12, %s351_s28  ;;  %136 = vrot.lane.b32.xlu0 %v207_v12, %s357_s21  ;;  %s358_s8 = smov [#allocation8]   ;;  %s359_s10 = smov [#allocation10]  }
 0x114   :  { %s167_s9 = sshll.u32 %s358_s8, 4  ;;  %s179_s11 = sshll.u32 %s359_s10, 4  ;;  %s168_s9 = int_to_ptr.vmem [resolvable:$true] %s167_s9  ;;  %s444_s11 = int_to_ptr.vmem [resolvable:$true] %s179_s11 }
 0x115   :  { %s298_s3 = scalar_lea.vmem %s168_s9, 128  ;;  %p303_p11 = scmp.lt.s32.totalorder %s168_s9, %s168_s9 }
 0x116   :  { %p299_p10 = scmp.ne.s32.totalorder %s168_s9, %s298_s3  ;;  %p304_p12 = scmp.lt.s32.totalorder %s298_s3, %s298_s3 }
 0x118   :  { %p305_p13 = por %p304_p12, %p303_p11 }
 0x11a   :  { %p306_p0 = pnand %p305_p13, %p299_p10 }
 0x17a   :  { %v143_v13 = vpop.permute.xlu1 %142  ;;  %v135_v14 = vpop.permute.xlu0 %134 }
 0x17b   :  { %148 = vst.msk [vmem:[#allocation10] sm:$0xf] %vm131_vm2, %v143_v13  ;;  %140 = vst.msk [vmem:[#allocation8] sm:$0xf] %vm131_vm2, %v135_v14 }
 0x185   :  { %v145_v15 = vpop.permute.xlu1 %144  ;;  %v137_v16 = vpop.permute.xlu0 %136 }
 0x186   :  { %149 = vst.msk [vmem:[#allocation10 + $0x4] sm:$0xf] %vm131_vm2, %v145_v15  ;;  %141 = vst.msk [vmem:[#allocation8 + $0x4] sm:$0xf] %vm131_vm2, %v137_v16 }
 0x187   :  { %309 = shalt.err (!%p306_p0)
}
 0x188   :  { %s310_s14 = scalar_lea.hbm %s487_s4, 128 }
 0x189   :  { %p311_p1 = scmp.ne.s32.totalorder %s487_s4, %s310_s14  ;;  %p314_p2 = scmp.lt.u32.totalorder %s310_s14, %s487_s4 }
 0x18b   :  { %p316_p3 = pnand %p314_p2, %p311_p1 }
 0x18d   :  { %319 = shalt.err (!%p316_p3)
}
 0x18e   :  { %173 = dma.vmem_to_hbm [thread:$0]  %s168_s9, 128, %s487_s4, [#allocation9], %s351_s28, %s351_s28, %s352_s29  }
 0x18f   :  { %s320_s1 = scalar_lea.vmem %s444_s11, 128  ;;  %p325_p5 = scmp.lt.s32.totalorder %s444_s11, %s444_s11 }
 0x190   :  { %p321_p4 = scmp.ne.s32.totalorder %s444_s11, %s320_s1  ;;  %p326_p6 = scmp.lt.s32.totalorder %s320_s1, %s320_s1 }
 0x192   :  { %p327_p7 = por %p326_p6, %p325_p5 }
 0x194   :  { %p328_p8 = pnand %p327_p7, %p321_p4 }
 0x196   :  { %331 = shalt.err (!%p328_p8)
}
 0x197   :  { %s332_s2 = scalar_lea.hbm %s488_s5, 128 }
 0x198   :  { %p333_p9 = scmp.ne.s32.totalorder %s488_s5, %s332_s2  ;;  %p336_p10 = scmp.lt.u32.totalorder %s332_s2, %s488_s5 }
 0x19a   :  { %p338_p11 = pnand %p336_p10, %p333_p9 }
 0x19c   :  { %341 = shalt.err (!%p338_p11)
}
 0x19d   :  { %185 = dma.vmem_to_hbm [thread:$0]  %s444_s11, 128, %s488_s5, [#allocation9], %s351_s28, %s351_s28, %s352_s29  }
 0x19e   :  { %346 = dma.done.wait [#allocation4], 128  }
 0x19f   :  { %347 = vsyncadd [#allocation4], 4294967168 }
 0x1a0   :  { %348 = dma.done.wait [#allocation9], 256  }
 0x1a1   :  { %349 = vsyncadd [#allocation9], 4294967040 }
 0x1a2   :  { %195 = vsyncpa [#allocation3], 1 }
 0x1a3   :  { %196 = vsyncpa [#allocation6], 1 }
 0x1a4   :  { %197 = vsyncpa [#allocation4], 1 }
 0x1a5   :  { %198 = vsyncpa [#allocation9], 1 }

</bundles_post_ra>
